<compile_context>
chip_gen: v5e
topology: v5e:2x2
jax: 0.10.0
libtpu: 0.0.40
codegen_flags: <defaults>
</compile_context>

<pallas_src>
import functools
import math

import jax
import jax.numpy as jnp
from jax.experimental import pallas as pl
from jax.experimental.pallas import tpu as pltpu

_LANE = 128
_SUB = 8
# 2048 rows x 128 lanes x 4 B = 1 MiB per input block; with 2 inputs x 2
# pipeline buffers = 4 MiB, safely inside the scoped-VMEM default on
# v5e (16 MiB) / v6e (32 MiB) / v7x (32 MiB of 64 MiB physical).
_MAX_BLOCK_ROWS = 2048


def _cdiv(a, b):
    return -(-a // b)


def _soft_dice_kernel(logits_ref, targets_ref, out_ref,
                      acc_pt_ref, acc_p_ref, acc_t_ref, *, smooth):
    k = pl.program_id(1)

    # Zero the three per-sample accumulators at the start of each sample's
    # reduction over feature chunks.
    @pl.when(k == 0)
    def _():
        acc_pt_ref[...] = jnp.zeros_like(acc_pt_ref)
        acc_p_ref[...] = jnp.zeros_like(acc_p_ref)
        acc_t_ref[...] = jnp.zeros_like(acc_t_ref)

    x = logits_ref[0].astype(jnp.float32)    # (rows_blk, 128)
    t = targets_ref[0].astype(jnp.float32)   # (rows_blk, 128)
    p = jax.nn.sigmoid(x)

    # Vreg-shaped partial sums: cheap VPU adds per step; the single expensive
    # cross-lane reduction is deferred to the epilogue.
    acc_pt_ref[...] += (p * t).reshape(-1, _SUB, _LANE).sum(axis=0)
    acc_p_ref[...] += p.reshape(-1, _SUB, _LANE).sum(axis=0)
    acc_t_ref[...] += t.reshape(-1, _SUB, _LANE).sum(axis=0)

    # Finalize this sample's dice score on the last feature chunk.
    @pl.when(k == pl.num_programs(1) - 1)
    def _():
        s_pt = jnp.sum(acc_pt_ref[...])
        s_p = jnp.sum(acc_p_ref[...])
        s_t = jnp.sum(acc_t_ref[...])
        score = 2.0 * (s_pt + smooth) / (s_p + s_t + smooth)
        out_ref[...] = jnp.broadcast_to(score, (1, _SUB, _LANE)).astype(jnp.float32)


def soft_dice_loss(logits, targets, smooth=1.0):
    """1 - mean_b[ 2*(sum(p*t)+s) / (sum(p)+sum(t)+s) ], p = sigmoid(logits)."""
    assert logits.shape == targets.shape
    B = int(logits.shape[0])
    N = int(math.prod(logits.shape[1:]))

    # No dtype upcast here — the kernel casts per-block (keeps HBM traffic at
    # exactly one read of each input, important for bf16 inputs).
    l2 = logits.reshape(B, N)
    t2 = targets.reshape(B, N)

    # Choose a large, (8,128)-aligned block along the flattened feature axis.
    rows_raw = _cdiv(N, _LANE)
    num_chunks = _cdiv(rows_raw, _MAX_BLOCK_ROWS)
    rows_blk = _cdiv(rows_raw, num_chunks)
    rows_blk = _cdiv(rows_blk, _SUB) * _SUB
    rows = num_chunks * rows_blk
    n_pad = rows * _LANE

    pad = n_pad - N
    if pad:
        # Padding contributes exactly 0 to all three sums:
        #   sigmoid(-1e9) == 0.0 in f32, padded target == 0.
        l2 = jnp.pad(l2, ((0, 0), (0, pad)), constant_values=-1e9)
        t2 = jnp.pad(t2, ((0, 0), (0, pad)), constant_values=0)

    l3 = l2.reshape(B, rows, _LANE)
    t3 = t2.reshape(B, rows, _LANE)

    out = pl.pallas_call(
        functools.partial(_soft_dice_kernel, smooth=float(smooth)),
        out_shape=jax.ShapeDtypeStruct((B, _SUB, _LANE), jnp.float32),
        grid_spec=pltpu.PrefetchScalarGridSpec(
            num_scalar_prefetch=0,
            grid=(B, num_chunks),
            in_specs=[
                pl.BlockSpec((1, rows_blk, _LANE), lambda b, k: (b, k, 0)),
                pl.BlockSpec((1, rows_blk, _LANE), lambda b, k: (b, k, 0)),
            ],
            out_specs=pl.BlockSpec((1, _SUB, _LANE), lambda b, k: (b, 0, 0)),
            scratch_shapes=[
                pltpu.VMEM((_SUB, _LANE), jnp.float32),  # sum p*t
                pltpu.VMEM((_SUB, _LANE), jnp.float32),  # sum p
                pltpu.VMEM((_SUB, _LANE), jnp.float32),  # sum t
            ],
        ),
        compiler_params=pltpu.CompilerParams(
            dimension_semantics=("parallel", "arbitrary")),
    )(l3, t3)

    scores = out[:, 0, 0]            # per-sample soft dice score
    return 1.0 - jnp.sum(scores) / B


if __name__ == "__main__":
    key = jax.random.PRNGKey(0)
    k1, k2 = jax.random.split(key)

    # Small NCHW shapes consistent with a 2D segmentation loss.
    B, C, H, W = 2, 4, 16, 16
    logits = jax.random.normal(k1, (B, C, H, W), dtype=jnp.float32) * 3.0
    targets = (jax.random.uniform(k2, (B, C, H, W)) > 0.5).astype(jnp.float32)

    loss = soft_dice_loss(logits, targets)
    loss = jax.block_until_ready(loss)

    # Pure-JAX reference (same math as the PyTorch SoftDiceLoss forward).
    probs = jax.nn.sigmoid(logits)
    m1 = probs.reshape(B, -1)
    m2 = targets.reshape(B, -1)
    inter = (m1 * m2).sum(axis=1)
    score = 2.0 * (inter + 1.0) / (m1.sum(axis=1) + m2.sum(axis=1) + 1.0)
    ref = 1.0 - score.sum() / B

    assert jnp.allclose(loss, ref, rtol=1e-5, atol=1e-6), (loss, ref)
    print("KERNEL_OK")
</pallas_src>

<mosaic_0001>
module attributes {stable_mosaic.version = 11 : i64} {
  func.func @_soft_dice_kernel(%arg0: i32, %arg1: i32, %arg2: memref<1x8x128xf32, #tpu.memory_space<vmem>>, %arg3: memref<1x8x128xf32, #tpu.memory_space<vmem>>, %arg4: memref<1x8x128xf32, #tpu.memory_space<vmem>>, %arg5: memref<8x128xf32, #tpu.memory_space<vmem>>, %arg6: memref<8x128xf32, #tpu.memory_space<vmem>>, %arg7: memref<8x128xf32, #tpu.memory_space<vmem>>) attributes {dimension_semantics = [#tpu.dimension_semantics<parallel>, #tpu.dimension_semantics<arbitrary>], iteration_bounds = array<i64: 2, 1>, scalar_prefetch = 0 : i64, scratch_operands = 3 : i64, tpu.core_type = #tpu.core_type<tc>, window_params = [{transform_indices = @transform_0, window_bounds = array<i64: 1, 8, 128>}, {transform_indices = @transform_1, window_bounds = array<i64: 1, 8, 128>}, {transform_indices = @transform_2, window_bounds = array<i64: 1, 8, 128>}]} {
    %c0_i32 = arith.constant 0 : i32
    %0 = arith.cmpi eq, %arg1, %c0_i32 : i32
    %1 = arith.extui %0 : i1 to i32
    %c0_i32_0 = arith.constant 0 : i32
    %2 = arith.cmpi ne, %1, %c0_i32_0 : i32
    scf.if %2 {
      %cst_23 = arith.constant 0.000000e+00 : f32
      %31 = vector.broadcast %cst_23 : f32 to vector<8x128xf32>
      %c0_24 = arith.constant 0 : index
      %c0_25 = arith.constant 0 : index
      %32 = vector.load %arg5[%c0_24, %c0_25] : memref<8x128xf32, #tpu.memory_space<vmem>>, vector<8x128xf32>
      tpu.vector_store %arg5[%c0_24, %c0_25], %31 {strides = array<i32>} : memref<8x128xf32, #tpu.memory_space<vmem>>, vector<8x128xf32>,
      %cst_26 = arith.constant 0.000000e+00 : f32
      %33 = vector.broadcast %cst_26 : f32 to vector<8x128xf32>
      %c0_27 = arith.constant 0 : index
      %c0_28 = arith.constant 0 : index
      %34 = vector.load %arg6[%c0_27, %c0_28] : memref<8x128xf32, #tpu.memory_space<vmem>>, vector<8x128xf32>
      tpu.vector_store %arg6[%c0_27, %c0_28], %33 {strides = array<i32>} : memref<8x128xf32, #tpu.memory_space<vmem>>, vector<8x128xf32>,
      %cst_29 = arith.constant 0.000000e+00 : f32
      %35 = vector.broadcast %cst_29 : f32 to vector<8x128xf32>
      %c0_30 = arith.constant 0 : index
      %c0_31 = arith.constant 0 : index
      %36 = vector.load %arg7[%c0_30, %c0_31] : memref<8x128xf32, #tpu.memory_space<vmem>>, vector<8x128xf32>
      tpu.vector_store %arg7[%c0_30, %c0_31], %35 {strides = array<i32>} : memref<8x128xf32, #tpu.memory_space<vmem>>, vector<8x128xf32>,
    } else {
    }
    %c0 = arith.constant 0 : index
    %c0_1 = arith.constant 0 : index
    %c0_2 = arith.constant 0 : index
    %3 = vector.load %arg2[%c0, %c0_1, %c0_2] : memref<1x8x128xf32, #tpu.memory_space<vmem>>, vector<1x8x128xf32>
    %4 = vector.shape_cast %3 : vector<1x8x128xf32> to vector<8x128xf32>
    %c0_3 = arith.constant 0 : index
    %c0_4 = arith.constant 0 : index
    %c0_5 = arith.constant 0 : index
    %5 = vector.load %arg3[%c0_3, %c0_4, %c0_5] : memref<1x8x128xf32, #tpu.memory_space<vmem>>, vector<1x8x128xf32>
    %6 = vector.shape_cast %5 : vector<1x8x128xf32> to vector<8x128xf32>
    %7 = arith.negf %4 : vector<8x128xf32>
    %8 = math.exp %7 : vector<8x128xf32>
    %cst = arith.constant 1.000000e+00 : f32
    %9 = vector.broadcast %cst : f32 to vector<8x128xf32>
    %10 = arith.addf %9, %8 : vector<8x128xf32>
    %11 = arith.divf %9, %10 : vector<8x128xf32>
    %c0_6 = arith.constant 0 : index
    %c0_7 = arith.constant 0 : index
    %12 = vector.load %arg5[%c0_6, %c0_7] : memref<8x128xf32, #tpu.memory_space<vmem>>, vector<8x128xf32>
    %13 = arith.mulf %11, %6 : vector<8x128xf32>
    %14 = vector.shape_cast %13 : vector<8x128xf32> to vector<1x8x128xf32>
    %cst_8 = arith.constant dense<0.000000e+00> : vector<8x128xf32>
    %15 = vector.multi_reduction <add>, %14, %cst_8 [0] : vector<1x8x128xf32> to vector<8x128xf32>
    %16 = arith.addf %12, %15 : vector<8x128xf32>
    %c0_9 = arith.constant 0 : index
    %c0_10 = arith.constant 0 : index
    %17 = vector.load %arg5[%c0_9, %c0_10] : memref<8x128xf32, #tpu.memory_space<vmem>>, vector<8x128xf32>
    tpu.vector_store %arg5[%c0_9, %c0_10], %16 {strides = array<i32>} : memref<8x128xf32, #tpu.memory_space<vmem>>, vector<8x128xf32>,
    %c0_11 = arith.constant 0 : index
    %c0_12 = arith.constant 0 : index
    %18 = vector.load %arg6[%c0_11, %c0_12] : memref<8x128xf32, #tpu.memory_space<vmem>>, vector<8x128xf32>
    %19 = vector.shape_cast %11 : vector<8x128xf32> to vector<1x8x128xf32>
    %cst_13 = arith.constant dense<0.000000e+00> : vector<8x128xf32>
    %20 = vector.multi_reduction <add>, %19, %cst_13 [0] : vector<1x8x128xf32> to vector<8x128xf32>
    %21 = arith.addf %18, %20 : vector<8x128xf32>
    %c0_14 = arith.constant 0 : index
    %c0_15 = arith.constant 0 : index
    %22 = vector.load %arg6[%c0_14, %c0_15] : memref<8x128xf32, #tpu.memory_space<vmem>>, vector<8x128xf32>
    tpu.vector_store %arg6[%c0_14, %c0_15], %21 {strides = array<i32>} : memref<8x128xf32, #tpu.memory_space<vmem>>, vector<8x128xf32>,
    %c0_16 = arith.constant 0 : index
    %c0_17 = arith.constant 0 : index
    %23 = vector.load %arg7[%c0_16, %c0_17] : memref<8x128xf32, #tpu.memory_space<vmem>>, vector<8x128xf32>
    %24 = vector.shape_cast %6 : vector<8x128xf32> to vector<1x8x128xf32>
    %cst_18 = arith.constant dense<0.000000e+00> : vector<8x128xf32>
    %25 = vector.multi_reduction <add>, %24, %cst_18 [0] : vector<1x8x128xf32> to vector<8x128xf32>
    %26 = arith.addf %23, %25 : vector<8x128xf32>
    %c0_19 = arith.constant 0 : index
    %c0_20 = arith.constant 0 : index
    %27 = vector.load %arg7[%c0_19, %c0_20] : memref<8x128xf32, #tpu.memory_space<vmem>>, vector<8x128xf32>
    tpu.vector_store %arg7[%c0_19, %c0_20], %26 {strides = array<i32>} : memref<8x128xf32, #tpu.memory_space<vmem>>, vector<8x128xf32>,
    %c0_i32_21 = arith.constant 0 : i32
    %28 = arith.cmpi eq, %arg1, %c0_i32_21 : i32
    %29 = arith.extui %28 : i1 to i32
    %c0_i32_22 = arith.constant 0 : i32
    %30 = arith.cmpi ne, %29, %c0_i32_22 : i32
    scf.if %30 {
      %c0_23 = arith.constant 0 : index
      %c0_24 = arith.constant 0 : index
      %31 = vector.load %arg5[%c0_23, %c0_24] : memref<8x128xf32, #tpu.memory_space<vmem>>, vector<8x128xf32>
      %32 = vector.shape_cast %31 : vector<8x128xf32> to vector<1x8x128xf32>
      %cst_25 = arith.constant dense<0.000000e+00> : vector<1xf32>
      %33 = vector.multi_reduction <add>, %32, %cst_25 [1, 2] : vector<1x8x128xf32> to vector<1xf32>
      %34 = vector.shape_cast %33 : vector<1xf32> to vector<1x1x1xf32>
      %35 = vector.extract %34[0, 0, 0] : f32 from vector<1x1x1xf32>
      %c0_26 = arith.constant 0 : index
      %c0_27 = arith.constant 0 : index
      %36 = vector.load %arg6[%c0_26, %c0_27] : memref<8x128xf32, #tpu.memory_space<vmem>>, vector<8x128xf32>
      %37 = vector.shape_cast %36 : vector<8x128xf32> to vector<1x8x128xf32>
      %cst_28 = arith.constant dense<0.000000e+00> : vector<1xf32>
      %38 = vector.multi_reduction <add>, %37, %cst_28 [1, 2] : vector<1x8x128xf32> to vector<1xf32>
      %39 = vector.shape_cast %38 : vector<1xf32> to vector<1x1x1xf32>
      %40 = vector.extract %39[0, 0, 0] : f32 from vector<1x1x1xf32>
      %c0_29 = arith.constant 0 : index
      %c0_30 = arith.constant 0 : index
      %41 = vector.load %arg7[%c0_29, %c0_30] : memref<8x128xf32, #tpu.memory_space<vmem>>, vector<8x128xf32>
      %42 = vector.shape_cast %41 : vector<8x128xf32> to vector<1x8x128xf32>
      %cst_31 = arith.constant dense<0.000000e+00> : vector<1xf32>
      %43 = vector.multi_reduction <add>, %42, %cst_31 [1, 2] : vector<1x8x128xf32> to vector<1xf32>
      %44 = vector.shape_cast %43 : vector<1xf32> to vector<1x1x1xf32>
      %45 = vector.extract %44[0, 0, 0] : f32 from vector<1x1x1xf32>
      %cst_32 = arith.constant 1.000000e+00 : f32
      %46 = arith.addf %35, %cst_32 : f32
      %cst_33 = arith.constant 2.000000e+00 : f32
      %47 = arith.mulf %cst_33, %46 : f32
      %48 = arith.addf %40, %45 : f32
      %cst_34 = arith.constant 1.000000e+00 : f32
      %49 = arith.addf %48, %cst_34 : f32
      %50 = arith.divf %47, %49 : f32
      %51 = vector.broadcast %50 : f32 to vector<1x8x128xf32>
      %c0_35 = arith.constant 0 : index
      %c0_36 = arith.constant 0 : index
      %c0_37 = arith.constant 0 : index
      %52 = vector.load %arg4[%c0_35, %c0_36, %c0_37] : memref<1x8x128xf32, #tpu.memory_space<vmem>>, vector<1x8x128xf32>
      tpu.vector_store %arg4[%c0_35, %c0_36, %c0_37], %51 {strides = array<i32>} : memref<1x8x128xf32, #tpu.memory_space<vmem>>, vector<1x8x128xf32>,
    } else {
    }
    return
  }
  func.func @transform_0(%arg0: i32, %arg1: i32) -> (i32, i32, i32) {
    %c0_i32 = arith.constant 0 : i32
    %c0_i32_0 = arith.constant 0 : i32
    return %arg0, %arg1, %c0_i32 : i32, i32, i32
  }
  func.func @transform_1(%arg0: i32, %arg1: i32) -> (i32, i32, i32) {
    %c0_i32 = arith.constant 0 : i32
    %c0_i32_0 = arith.constant 0 : i32
    return %arg0, %arg1, %c0_i32 : i32, i32, i32
  }
  func.func @transform_2(%arg0: i32, %arg1: i32) -> (i32, i32, i32) {
    %c0_i32 = arith.constant 0 : i32
    %c0_i32_0 = arith.constant 0 : i32
    %c0_i32_1 = arith.constant 0 : i32
    return %arg0, %c0_i32, %c0_i32_0 : i32, i32, i32
  }
}

</mosaic_0001>

<bundles_post_ra>
// kernel: tpu_custom_call.1
= control target key start
LH: loop header
LB: loop body
LE: loop exit
PB: predicated region body
PF: predicated region fallthrough
CT: control target
= control target key end

     0   :  { %7 = vsyncpa [#allocation6], 0  ;;  %s828_s0 = inlined_call_operand.hbm [shape: f32[2,8,128], index: 0, kind: input, shape index: {}]   ;;  %s829_s1 = inlined_call_operand.hbm [shape: f32[2,8,128], index: 1, kind: input, shape index: {}]   ;;  %s830_s2 = inlined_call_operand.hbm [shape: f32[2,8,128], index: 2, kind: output, shape index: {}]  }
   0x1   :  { %9 = vsyncpa [#allocation6 + $0x1], 0 }
   0x2   :  { %10 = vsyncpa [#allocation9], 0 }
   0x3   :  { %12 = vsyncpa [#allocation9 + $0x1], 0 }
   0x4   :  { %13 = vsyncpa [#allocation7], 0 }
   0x5   :  { %15 = vsyncpa [#allocation7 + $0x1], 0  ;;  %s695_s9 = smov 0   ;;  %s697_s10 = smov 0  }
   0x6   :  { %s699_s11 = smov 0   ;;  %s701_s12 = smov 0  }
   0x7   :  { %s703_s13 = smov 0   ;;  %s705_s14 = smov 0  }
   0x8 LB: > { %s434_s15 = sadd.s32 4294967295, %s678_s14   ;;  %s435_s16 = sadd.s32 4294967294, %s678_s14   ;;  %s678_s14 = sphi %s705_s14, %s21_s14   ;;  %s674_s13 = sphi %s703_s13, %s839_s13   ;;  %s670_s12 = sphi %s701_s12, %s838_s12   ;;  %s666_s11 = sphi %s699_s11, %s837_s11   ;;  %s662_s10 = sphi %s697_s10, %s836_s10   ;;  %s658_s9 = sphi %s695_s9, %s835_s9  }
   0x9   : > { %s33_s17 = sadd.s32 1, %s674_s13  ;;  %s42_s18 = sadd.s32 1, %s666_s11 }
   0xa   : > { %p35_p0 = scmp.ge.s32.totalorder %s33_s17, 2  ;;  %p49_p1 = scmp.ne.s32.totalorder %s666_s11, %s662_s10 }
   0xb   : > { %p50_p2 = scmp.eq.s32.totalorder %s678_s14, 0  ;;  %p55_p3 = scmp.ne.s32.totalorder %s662_s10, %s658_s9 }
   0xc   : > { %s841_s17 = smov (%p35_p0, %s33_s17), 0  ;;  %p56_p5 = scmp.eq.s32.totalorder %s434_s15, 0 }
   0xd   : > { %p736_p4 = por %p50_p2, %p49_p1  ;;  %s37_s20 = ssub.s32 %s674_s13, %s841_s17 }
   0xe   : > { %p107_p6 = scmp.eq.s32.totalorder %s434_s15, 1  ;;  %p40_p7 = scmp.eq.s32.totalorder %s37_s20, 0 }
   0xf   : > { %p742_p8 = por %p56_p5, %p55_p3  ;;  %p113_p10 = scmp.eq.s32.totalorder %s435_s16, 1 }
  0x10   : > { %p746_p9 = por %p107_p6, %p49_p1  ;;  %p437_p12 = scmp.ge.s32.totalorder %s678_s14, 2 }
  0x11   : > { %s751_s23 = scalar_select %p40_p7, %s666_s11, %s42_s18  }
  0x12   : > { %p753_p11 = por %p113_p10, %p55_p3  ;;  %p476_p13 = scmp.lt.s32.totalorder %s678_s14, 2 }
  0x13   : > { %s133_s25 = sand.u32 1, %s666_s11   ;;  %s439_s27 = sshll.u32 %s674_s13, 3 }
  0x14   : > { %s438_s26 = sshll.u32 %s133_s25, 3  ;;  %s142_s30 = scalar_lea.hbm %s828_s0, %s439_s27 }
  0x15   : > { %s137_s3 = scalar_lea.vmem [#allocation5], %s438_s26  ;;  %s144_s5 = sshll.u32 %s142_s30, 4  ;;  %s145_s5 = int_to_ptr.hbm [resolvable:$true] %s144_s5 }
  0x16   : > { %s146_s4 = sshll.u32 %s137_s3, 4  ;;  %p466_p0 = pnand %p476_p13, %p736_p4  ;;  %s147_s4 = int_to_ptr.vmem [resolvable:$true] %s146_s4 }
  0x17   : > { %p442_p1 = scmp.ge.s32.totalorder %s678_s14, 1  ;;  %p171_p2 = scmp.lt.s32.totalorder %s678_s14, 3 }
  0x18   : > { %s134_s6 = scalar_lea.sflag [#allocation6], %s133_s25  ;;  %s162_s15 = scalar_lea.hbm %s829_s1, %s439_s27 }
  0x19   : > { %468 = dma.hbm_to_vmem [thread:$0]  (!%p466_p0), %s145_s5, 128, %s147_s4, %s134_s6  }
  0x1a   : > { %p172_p3 = pnand %p442_p1, %p171_p2  ;;  %s157_s16 = scalar_lea.vmem [#allocation8], %s438_s26 }
  0x1b   : > { %s166_s18 = sshll.u32 %s157_s16, 4  ;;  %s164_s20 = sshll.u32 %s162_s15, 4  ;;  %s167_s18 = int_to_ptr.vmem [resolvable:$true] %s166_s18  ;;  %s165_s20 = int_to_ptr.hbm [resolvable:$true] %s164_s20 }
  0x1c   : > { %s154_s28 = scalar_lea.sflag [#allocation9], %s133_s25  ;;  %175 = sbr.rel (%p172_p3) target bundleno = 332 (0x14c), region = 28 }
  0x1d   : > { %471 = dma.hbm_to_vmem [thread:$0]  (!%p466_p0), %s165_s20, 128, %s167_s18, %s154_s28  }
  0x1e   : > { %s772_s19 = sand.u32 (!%p172_p3), 1, %s662_s10  }
  0x1f   : > { %s775_s29 = sshll.u32 (!%p172_p3), %s772_s19, 3  ;;  %s178_s30 = scalar_lea.sflag (!%p172_p3), [#allocation6], %s772_s19 }
  0x20   : > { %s181_s3 = scalar_lea.vmem (!%p172_p3), [#allocation5], %s775_s29 }
  0x21   : > { %645 = dma.done.wait (%p742_p8), %s178_s30, 128  }
  0x22   : > { %647 = vsyncadd (%p742_p8), %s178_s30, 4294967168  ;;  %s188_s25 = scalar_lea.sflag [#allocation9], %s772_s19  ;;  %s191_s26 = scalar_lea.vmem [#allocation8], %s775_s29 }
  0x23   : > { %649 = dma.done.wait (%p742_p8), %s188_s25, 128  }
  0x24   : > { %651 = vsyncadd (%p742_p8), %s188_s25, 4294967168  ;;  %v225_v0 = vld [vmem:[%s181_s3] sm:$0xff]  ;;  %v226_v1 = vld [vmem:[%s191_s26] sm:$0xff]  ;;  %s448_s7 = sshll.u32 %s670_s12, 3  ;;  %s217_s20 = scalar_lea.vmem [#allocation10], %s775_s29 }
  0x25   : > { %v446_v2 = vmul.f32 -1.442695, %v225_v0  ;;  %283 = vadd.xlane.f32.xlu1 %v226_v1  ;;  %s326_s18 = scalar_lea.hbm %s830_s2, %s448_s7  ;;  %s328_s28 = sshll.u32 %s217_s20, 4  ;;  %s329_s28 = int_to_ptr.vmem [resolvable:$true] %s328_s28 }
  0x26   : > { %s330_s3 = sshll.u32 %s326_s18, 4  ;;  %s612_s29 = scalar_lea.hbm %s830_s2, 16  ;;  %s331_s3 = int_to_ptr.hbm [resolvable:$true] %s330_s3 }
  0x27   : > { %526 = vpow2.f32 %v446_v2 }
  0x2d   : > { %v527_v3 = vpop.eup %526 }
  0x2e   : > { %v230_v4 = vadd.f32 1.0, %v527_v3 }
  0x30   : > { %528 = vrcp.f32 %v230_v4  ;;  %v242_v7 = vand.u32 2147483648, %v230_v4  ;;  %vm236_vm0 = vweird.f32 %v230_v4  ;;  %v240_v9 = vand.u32 2147483647, %v230_v4 }
  0x32   : > { %v243_v11 = vor.u32 1.1754944e-38, %v242_v7  ;;  %vm241_vm3 = vcmp.eq.f32.partialorder %v240_v9, 8.507059e+37 }
  0x36   : > { %v529_v5 = vpop.eup %528 }
  0x37   : > { %v232_v6 = vmul.f32 %v529_v5, %v230_v4  ;;  %vm237_vm1 = vweird.f32 %v529_v5 }
  0x38   : > { %vm238_vm2 = vmor %vm236_vm0, %vm237_vm1 }
  0x39   : > { %v233_v8 = vsub.f32 1.0, %v232_v6 }
  0x3b   : > { %v234_v10 = vmul.f32 %v529_v5, %v233_v8 }
  0x3d   : > { %v235_v12 = vadd.f32 %v529_v5, %v234_v10 }
  0x3f   : > { %v239_v13 = vsel %vm238_vm2, %v529_v5, %v235_v12 }
  0x40   : > { %v244_v14 = vsel %vm241_vm3, %v243_v11, %v239_v13 }
  0x41   : > { %v247_v15 = vmul.f32 %v244_v14, %v226_v1 }
  0x43   : > { %263 = vadd.xlane.f32.xlu0 %v247_v15 }
  0x4b   : > { %273 = vadd.xlane.f32.xlu0 %v244_v14 }
  0x98   : > { %v284_v16 = vpop.xlane.xlu1 %283 }
  0x99   : > { %v285_v18 = vrot.slane %v284_v16, 4 }
  0x9b   : > { %v286_v21 = vadd.f32 %v285_v18, %v284_v16 }
  0x9d   : > { %v287_v24 = vrot.slane %v286_v21, 2 }
  0x9f   : > { %v288_v30 = vadd.f32 %v287_v24, %v286_v21 }
  0xa1   : > { %v289_v33 = vrot.slane %v288_v30, 1 }
  0xa3   : > { %v290_v36 = vadd.f32 %v289_v33, %v288_v30 }
  0xb6   : > { %v264_v17 = vpop.xlane.xlu0 %263 }
  0xb7   : > { %v265_v19 = vrot.slane %v264_v17, 4 }
  0xb9   : > { %v266_v20 = vadd.f32 %v265_v19, %v264_v17 }
  0xbb   : > { %v267_v22 = vrot.slane %v266_v20, 2 }
  0xbd   : > { %v268_v23 = vadd.f32 %v267_v22, %v266_v20 }
  0xbe   : > { %v274_v25 = vpop.xlane.xlu0 %273 }
  0xbf   : > { %v275_v26 = vrot.slane %v274_v25, 4  ;;  %v269_v27 = vrot.slane %v268_v23, 1 }
  0xc1   : > { %v276_v28 = vadd.f32 %v275_v26, %v274_v25  ;;  %v270_v29 = vadd.f32 %v269_v27, %v268_v23 }
  0xc3   : > { %v277_v31 = vrot.slane %v276_v28, 2  ;;  %451 = vpush %v270_v29 }
  0xc5   : > { %v278_v32 = vadd.f32 %v277_v31, %v276_v28 }
  0xc7   : > { %v279_v34 = vrot.slane %v278_v32, 1 }
  0xc9   : > { %v280_v35 = vadd.f32 %v279_v34, %v278_v32 }
  0xcb   : > { %453 = vpush %v280_v35 }
  0xcc   : > { %455 = vpush %v290_v36 }
  0xf4   : > { %s452_s21 = spop %451 }
  0xf5   : > { %s292_s8 = sadd.f32 1.0, %s452_s21 }
  0xf7   : > { %s293_s30 = smul.f32 2.0, %s292_s8 }
  0xfc   : > { %s454_s27 = spop %453 }
  0xfd   : > { %s456_s4 = spop %455 }
  0xfe   : > { %s294_s5 = sadd.f32 %s456_s4, %s454_s27  ;;  %s316_s27 = scalar_lea.sflag [#allocation7], %s772_s19 }
  0xff   : > { %s606_s4 = sshra.s32 %s331_s3, 4  ;;  %s607_s4 = int_to_ptr.hbm [resolvable:$true] %s606_s4 }
 0x100   : > { %s295_s6 = sadd.f32 1.0, %s294_s5  ;;  %s608_s12 = scalar_lea.hbm %s607_s4, 8 }
 0x101   : > { %p609_p4 = scmp.ne.s32.totalorder %s607_s4, %s608_s12  ;;  %p613_p7 = scmp.lt.s32.totalorder %s607_s4, %s830_s2 }
 0x102   : > { %v296_v37 = vstv %s295_s6  ;;  %p614_p8 = scmp.lt.s32.totalorder %s612_s29, %s608_s12 }
 0x103   : > { %530 = vrcp.f32 %v296_v37  ;;  %v308_v41 = vand.u32 2147483648, %v296_v37  ;;  %v306_v43 = vand.u32 2147483647, %v296_v37  ;;  %vm302_vm5 = vweird.f32 %v296_v37  ;;  %p610_p5 = pnand %p609_p4, %p746_p9 }
 0x104   : > { %p615_p10 = por %p614_p8, %p613_p7 }
 0x105   : > { %v309_v45 = vor.u32 1.1754944e-38, %v308_v41  ;;  %vm307_vm7 = vcmp.eq.f32.partialorder %v306_v43, 8.507059e+37  ;;  %p611_p6 = pneg %p610_p5 }
 0x107   : > { %p616_p13 = pnand %p615_p10, %p611_p6 }
 0x109   : > { %v531_v38 = vpop.eup %530 }
 0x10a   : > { %v298_v39 = vmul.f32 %v531_v38, %v296_v37  ;;  %vm303_vm4 = vweird.f32 %v531_v38 }
 0x10b   : > { %vm304_vm6 = vmor %vm302_vm5, %vm303_vm4 }
 0x10c   : > { %v299_v40 = vsub.f32 1.0, %v298_v39 }
 0x10e   : > { %v300_v42 = vmul.f32 %v531_v38, %v299_v40 }
 0x110   : > { %v301_v44 = vadd.f32 %v531_v38, %v300_v42 }
 0x112   : > { %v305_v46 = vsel %vm304_vm6, %v531_v38, %v301_v44 }
 0x113   : > { %v310_v47 = vsel %vm307_vm7, %v309_v45, %v305_v46 }
 0x114   : > { %457 = vpush %v310_v47 }
 0x145   : > { %s458_s25 = spop %457 }
 0x146   : > { %s312_s26 = smul.f32 %s458_s25, %s293_s30 }
 0x148   : > { %v313_v48 = vstv %s312_s26 }
 0x149   : > { %314 = vst [vmem:[%s217_s20] sm:$0xff] %v313_v48 }
 0x14a   : > { %619 = shalt.err (!%p616_p13)
}
 0x14b   : > { %463 = dma.vmem_to_hbm [thread:$0]  (%p746_p9), %s329_s28, 128, %s331_s3, %s316_s27  }
 0x14c PF: > { %s342_s19 = sand.u32 1, %s658_s9   ;;  %p473_p0 = pnand %p437_p12, %p753_p11 }
 0x14d   : > { %s343_s8 = scalar_lea.sflag [#allocation7], %s342_s19 }
 0x14e   : > { %p474_p1 = pneg %p473_p0 }
 0x150   : > { %653 = dma.done.wait (%p474_p1), %s343_s8, 128  }
 0x151   : > { %655 = vsyncadd (%p474_p1), %s343_s8, 4294967168  ;;  %s21_s14 = sadd.s32 1, %s678_s14   ;;  %s835_s9 = smov %s662_s10 }
 0x152   : > { %p18_p2 = scmp.ge.s32.totalorder %s21_s14, 4   ;;  %s836_s10 = smov %s666_s11 }
 0x153   : > { %s837_s11 = smov %s751_s23  ;;  %s838_s12 = smov %s674_s13 }
 0x154   : > { %s839_s13 = smov %s841_s17  ;;  %20 = sbr.rel (!%p18_p2) target bundleno = 8 (0x8), region = 94 }
 0x159   :  { %349 = vsyncpa [#allocation6], 1 }
 0x15a   :  { %351 = vsyncpa [#allocation6 + $0x1], 1 }
 0x15b   :  { %352 = vsyncpa [#allocation9], 1 }
 0x15c   :  { %354 = vsyncpa [#allocation9 + $0x1], 1 }
 0x15d   :  { %355 = vsyncpa [#allocation7], 1 }
 0x15e   :  { %357 = vsyncpa [#allocation7 + $0x1], 1 }

</bundles_post_ra>
